<compile_context>
chip_gen: v6e
topology: v6e:2x2x1
jax: 0.10.0
libtpu: 0.0.40
codegen_flags: <defaults>
</compile_context>

<pallas_src>
import numpy as np
import jax
import jax.numpy as jnp
from jax.experimental import pallas as pl
from jax.experimental.pallas import tpu as pltpu


# ---------------------------------------------------------------------------
# Static (offset, size) layout of the packed buffers.
#   wa (448 x 128) = [ conv1-matrix | fc2(pad) | fc3(pad) ]   (row-stacked)
#   wb (640 x 256) = [ conv2-matrix | fc1(pad) ]
#   wc (256 x 512) =   conv3-matrix
#   bias (1 x 1408) = [cb1 | cb2 | cb3 | bf1p | bf2p | bf3p]  (lane-stacked)
# ---------------------------------------------------------------------------
_WA_M1, _WA_WF2, _WA_WF3 = (0, 64), (64, 256), (320, 128)
_WB_M2, _WB_WF1 = (0, 128), (128, 512)
_B_C1, _B_C2, _B_C3 = (0, 128), (128, 256), (384, 512)
_B_F1, _B_F2, _B_F3 = (896, 256), (1152, 128), (1280, 128)


# ---------------------------------------------------------------------------
# Fused kernel: entire network on one batch tile.
# ---------------------------------------------------------------------------
def _fused_kernel(x_ref, wa_ref, wb_ref, wc_ref, b_ref, o_ref):
    def rows(ref, off_size):
        o, s = off_size
        return ref[pl.ds(o, s), :]

    def lanes(ref, off_size):
        o, s = off_size
        return ref[:, pl.ds(o, s)]

    def dense(h16, w16, bias_f32, relu, keep_bf16):
        y = jnp.dot(h16, w16, preferred_element_type=jnp.float32) + bias_f32
        if relu:
            y = jnp.maximum(y, 0.0)
        return y.astype(jnp.bfloat16) if keep_bf16 else y

    h = x_ref[...]                                                     # (TM, 64) bf16
    h = dense(h, rows(wa_ref, _WA_M1),  lanes(b_ref, _B_C1), True,  True)   # conv1+relu -> 128
    h = dense(h, rows(wb_ref, _WB_M2),  lanes(b_ref, _B_C2), True,  True)   # conv2+relu -> 256
    h = dense(h, wc_ref[...],           lanes(b_ref, _B_C3), False, True)   # conv3      -> 512
    h = dense(h, rows(wb_ref, _WB_WF1), lanes(b_ref, _B_F1), True,  True)   # fc1+relu   -> 256
    h = dense(h, rows(wa_ref, _WA_WF2), lanes(b_ref, _B_F2), True,  True)   # fc2+relu   -> 128
    z = dense(h, rows(wa_ref, _WA_WF3), lanes(b_ref, _B_F3), False, False)  # fc3 (f32)  -> 128

    # Softmax over the 128 lane-padded class dim; padded logits are -1e30 so
    # their exp is exactly 0 and only the 3 real classes contribute.
    m = jnp.max(z, axis=-1, keepdims=True)
    e = jnp.exp(z - m)
    s = jnp.sum(e, axis=-1, keepdims=True)
    r = pl.reciprocal(s, approx=True)      # EUP vrcp (approx)
    r = r * (2.0 - s * r)                  # Newton step 1
    r = r * (2.0 - s * r)                  # Newton step 2 -> ~f32 accuracy
    o_ref[...] = (e * r).astype(o_ref.dtype)


def _round_up(n, m):
    return (n + m - 1) // m * m


def simulator_reward(x, params):
    """Forward pass matching SimulatorReward.forward. Returns (N, 3) float32."""
    # x.reshape(-1,4,4,4) flattened row-major per sample == NCHW order, i.e.
    # exactly the order PyTorch's final x.view(-1, 512) uses -> no transpose.
    x = x.reshape(-1, 4 * 4 * 4).astype(jnp.bfloat16)            # (N, 64)
    n = x.shape[0]

    # Batch tiling: one small tile for tiny batches; 512-row tiles (parallel
    # grid axis) for large batches so v7x's two TensorCores split the work.
    if n <= 512:
        tm = _round_up(max(n, 16), 16)
    else:
        tm = 512
    n_pad = _round_up(n, tm)
    if n_pad != n:
        x = jnp.pad(x, ((0, n_pad - n), (0, 0)))

    const = lambda i: (0, 0)                 # weights: fetched once, VMEM-resident
    out = pl.pallas_call(
        _fused_kernel,
        out_shape=jax.ShapeDtypeStruct((n_pad, 128), jnp.float32),
        grid_spec=pltpu.PrefetchScalarGridSpec(
            num_scalar_prefetch=0,
            grid=(n_pad // tm,),
            in_specs=[
                pl.BlockSpec((tm, 64), lambda i: (i, 0)),      # x batch tile
                pl.BlockSpec(params["wa"].shape, const),       # packed weights
                pl.BlockSpec(params["wb"].shape, const),
                pl.BlockSpec(params["wc"].shape, const),
                pl.BlockSpec(params["bias"].shape, const),     # packed biases
            ],
            out_specs=pl.BlockSpec((tm, 128), lambda i: (i, 0)),
        ),
        compiler_params=pltpu.CompilerParams(
            dimension_semantics=("parallel",)),
    )(x, params["wa"], params["wb"], params["wc"], params["bias"])
    return out[:n, :3]


# ---------------------------------------------------------------------------
# Init-time lowering of a 3x3 / pad=1 conv over a 4x4 grid to an exact dense
# matrix acting on the NCHW-flattened per-sample vector:
#   w_oihw: (Cout, Cin, 3, 3) -> M: (Cin*16, Cout*16);  out = in @ M + bias16
# ---------------------------------------------------------------------------
def _conv_to_dense(w_oihw, H=4, W=4):
    co_n, ci_n, kh_n, kw_n = w_oihw.shape
    M = np.zeros((ci_n * H * W, co_n * H * W), np.float32)
    for kh in range(kh_n):
        for kw in range(kw_n):
            tap = np.asarray(w_oihw[:, :, kh, kw], np.float32).T   # (Cin, Cout)
            for ho in range(H):
                hi = ho + kh - 1
                if not 0 <= hi < H:
                    continue
                for wo in range(W):
                    wi = wo + kw - 1
                    if not 0 <= wi < W:
                        continue
                    r = np.arange(ci_n) * (H * W) + hi * W + wi
                    c = np.arange(co_n) * (H * W) + ho * W + wo
                    M[np.ix_(r, c)] = tap
    return M


# ---------------------------------------------------------------------------
# Parameters: deterministic synthetic init with PyTorch-equivalent shapes,
# pre-lowered + lane-padded + packed into the 4 buffers the kernel consumes.
# ---------------------------------------------------------------------------
def init_params(key):
    ks = jax.random.split(key, 12)

    def w(k, shape, fan_in):
        a = np.asarray(jax.random.normal(k, shape, jnp.float32))
        return (a / np.sqrt(fan_in)).astype(np.float32)

    raw = dict(
        w1=w(ks[0], (8, 4, 3, 3), 36),     b1=w(ks[1], (8,), 36),
        w2=w(ks[2], (16, 8, 3, 3), 72),    b2=w(ks[3], (16,), 72),
        w3=w(ks[4], (32, 16, 3, 3), 144),  b3=w(ks[5], (32,), 144),
        wf1=w(ks[6], (512, 200), 512),     bf1=w(ks[7], (200,), 512),
        wf2=w(ks[8], (200, 100), 200),     bf2=w(ks[9], (100,), 200),
        wf3=w(ks[10], (100, 3), 100),      bf3=w(ks[11], (3,), 100),
    )

    m1 = _conv_to_dense(raw["w1"])           # (64, 128)
    m2 = _conv_to_dense(raw["w2"])           # (128, 256)
    m3 = _conv_to_dense(raw["w3"])           # (256, 512)

    # Lane-dense padding of the fc layers (200->256, 100->128, 3->128).
    wf1p = np.zeros((512, 256), np.float32); wf1p[:, :200] = raw["wf1"]
    wf2p = np.zeros((256, 128), np.float32); wf2p[:200, :100] = raw["wf2"]
    wf3p = np.zeros((128, 128), np.float32); wf3p[:100, :3] = raw["wf3"]

    bf1p = np.zeros((256,), np.float32); bf1p[:200] = raw["bf1"]
    bf2p = np.zeros((128,), np.float32); bf2p[:100] = raw["bf2"]
    bf3p = np.full((128,), -1e30, np.float32); bf3p[:3] = raw["bf3"]  # pad -> softmax 0

    packed = {
        "wa": jnp.asarray(np.concatenate([m1, wf2p, wf3p], 0), jnp.bfloat16),
        "wb": jnp.asarray(np.concatenate([m2, wf1p], 0), jnp.bfloat16),
        "wc": jnp.asarray(m3, jnp.bfloat16),
        "bias": jnp.asarray(np.concatenate(
            [np.repeat(raw["b1"], 16), np.repeat(raw["b2"], 16),
             np.repeat(raw["b3"], 16), bf1p, bf2p, bf3p])[None, :], jnp.float32),
    }
    return packed, raw


# ---------------------------------------------------------------------------
# References for validation.
# ---------------------------------------------------------------------------
def reference_bf16_mirror(x, params):
    """Exact mirror of the kernel math in plain JAX (same packed bf16 params)."""
    wa, wb, wc, b = params["wa"], params["wb"], params["wc"], params["bias"]

    def dense(h, w, bias, relu, keep_bf16):
        y = jnp.dot(h, w, preferred_element_type=jnp.float32) + bias
        if relu:
            y = jnp.maximum(y, 0.0)
        return y.astype(jnp.bfloat16) if keep_bf16 else y

    def rows(a, os): return a[os[0]:os[0] + os[1]]
    def lanes(a, os): return a[:, os[0]:os[0] + os[1]]

    h = x.reshape(-1, 64).astype(jnp.bfloat16)
    h = dense(h, rows(wa, _WA_M1),  lanes(b, _B_C1), True,  True)
    h = dense(h, rows(wb, _WB_M2),  lanes(b, _B_C2), True,  True)
    h = dense(h, wc,                lanes(b, _B_C3), False, True)
    h = dense(h, rows(wb, _WB_WF1), lanes(b, _B_F1), True,  True)
    h = dense(h, rows(wa, _WA_WF2), lanes(b, _B_F2), True,  True)
    z = dense(h, rows(wa, _WA_WF3), lanes(b, _B_F3), False, False)
    return jax.nn.softmax(z, axis=-1)[:, :3]


def reference_f32_torch(x, raw):
    """Full-precision reference following the PyTorch module literally."""
    v = x.reshape(-1, 4, 4, 4).astype(jnp.float32)

    def conv(v, wname, bname):
        y = jax.lax.conv_general_dilated(
            v, jnp.asarray(raw[wname]), window_strides=(1, 1),
            padding=((1, 1), (1, 1)),
            dimension_numbers=("NCHW", "OIHW", "NCHW"))
        return y + jnp.asarray(raw[bname])[None, :, None, None]

    v = jax.nn.relu(conv(v, "w1", "b1"))
    v = jax.nn.relu(conv(v, "w2", "b2"))
    v = conv(v, "w3", "b3")
    h = v.reshape(-1, 512)
    h = jax.nn.relu(h @ raw["wf1"] + raw["bf1"])
    h = jax.nn.relu(h @ raw["wf2"] + raw["bf2"])
    z = h @ raw["wf3"] + raw["bf3"]
    return jax.nn.softmax(z, axis=-1)


if __name__ == "__main__":
    key = jax.random.PRNGKey(0)
    pkey, xkey = jax.random.split(key)
    params, raw = init_params(pkey)

    # batch = 8 boards of shape (4, 4, 4) — NCHW, as the PyTorch module expects.
    x = jax.random.normal(xkey, (8, 4, 4, 4), jnp.float32)

    fwd = jax.jit(simulator_reward)
    out = jax.block_until_ready(fwd(x, params))

    assert out.shape == (8, 3), out.shape
    assert out.dtype == jnp.float32
    out_np = np.asarray(out)

    row_sums = out_np.sum(axis=-1)
    assert np.all(np.abs(row_sums - 1.0) < 1e-5), row_sums

    mirror = np.asarray(reference_bf16_mirror(x, params))
    assert np.allclose(out_np, mirror, atol=2e-3), \
        float(np.max(np.abs(out_np - mirror)))

    full = np.asarray(reference_f32_torch(x, raw))
    assert np.allclose(out_np, full, atol=3e-2), \
        float(np.max(np.abs(out_np - full)))

    print("KERNEL_OK")
</pallas_src>

<mosaic_0001>
module attributes {stable_mosaic.version = 11 : i64} {
  func.func @_fused_kernel(%arg0: i32, %arg1: memref<16x64xbf16, #tpu.memory_space<vmem>>, %arg2: memref<448x128xbf16, #tpu.memory_space<vmem>>, %arg3: memref<640x256xbf16, #tpu.memory_space<vmem>>, %arg4: memref<256x512xbf16, #tpu.memory_space<vmem>>, %arg5: memref<1x1408xf32, #tpu.memory_space<vmem>>, %arg6: memref<16x128xf32, #tpu.memory_space<vmem>>) attributes {dimension_semantics = [#tpu.dimension_semantics<parallel>], iteration_bounds = array<i64: 1>, scalar_prefetch = 0 : i64, scratch_operands = 0 : i64, tpu.core_type = #tpu.core_type<tc>, window_params = [{transform_indices = @transform_0, window_bounds = array<i64: 16, 64>}, {pipeline_mode = #tpu.pipeline_mode<synchronous>, transform_indices = @transform_1, window_bounds = array<i64: 448, 128>}, {pipeline_mode = #tpu.pipeline_mode<synchronous>, transform_indices = @transform_2, window_bounds = array<i64: 640, 256>}, {pipeline_mode = #tpu.pipeline_mode<synchronous>, transform_indices = @transform_3, window_bounds = array<i64: 256, 512>}, {pipeline_mode = #tpu.pipeline_mode<synchronous>, transform_indices = @transform_4, window_bounds = array<i64: 1, 1408>}, {transform_indices = @transform_5, window_bounds = array<i64: 16, 128>}]} {
    %c0 = arith.constant 0 : index
    %c0_0 = arith.constant 0 : index
    %0 = vector.load %arg1[%c0, %c0_0] : memref<16x64xbf16, #tpu.memory_space<vmem>>, vector<16x64xbf16>
    %c0_1 = arith.constant 0 : index
    %c0_2 = arith.constant 0 : index
    %1 = vector.load %arg2[%c0_1, %c0_2] : memref<448x128xbf16, #tpu.memory_space<vmem>>, vector<64x128xbf16>
    %c0_3 = arith.constant 0 : index
    %c0_4 = arith.constant 0 : index
    %2 = vector.load %arg5[%c0_3, %c0_4] : memref<1x1408xf32, #tpu.memory_space<vmem>>, vector<1x128xf32>
    %cst = arith.constant dense<0.000000e+00> : vector<16x128xf32>
    %3 = tpu.matmul %0, %1, %cst {dimension_numbers = #tpu.dot_dimension_numbers<[1], [0], [0], [1], [0, 0, 1, 1], [], []>} : vector<16x64xbf16>, vector<64x128xbf16>, vector<16x128xf32> -> vector<16x128xf32>
    %4 = vector.broadcast %2 : vector<1x128xf32> to vector<16x128xf32>
    %5 = arith.addf %3, %4 : vector<16x128xf32>
    %cst_5 = arith.constant 0.000000e+00 : f32
    %6 = vector.broadcast %cst_5 : f32 to vector<16x128xf32>
    %7 = arith.maximumf %5, %6 : vector<16x128xf32>
    %8 = arith.truncf %7 : vector<16x128xf32> to vector<16x128xbf16>
    %c0_6 = arith.constant 0 : index
    %c0_7 = arith.constant 0 : index
    %9 = vector.load %arg3[%c0_6, %c0_7] : memref<640x256xbf16, #tpu.memory_space<vmem>>, vector<128x256xbf16>
    %c0_8 = arith.constant 0 : index
    %c128 = arith.constant 128 : index
    %10 = vector.load %arg5[%c0_8, %c128] : memref<1x1408xf32, #tpu.memory_space<vmem>>, vector<1x256xf32>
    %cst_9 = arith.constant dense<0.000000e+00> : vector<16x256xf32>
    %11 = tpu.matmul %8, %9, %cst_9 {dimension_numbers = #tpu.dot_dimension_numbers<[1], [0], [0], [1], [0, 0, 1, 1], [], []>} : vector<16x128xbf16>, vector<128x256xbf16>, vector<16x256xf32> -> vector<16x256xf32>
    %12 = vector.broadcast %10 : vector<1x256xf32> to vector<16x256xf32>
    %13 = arith.addf %11, %12 : vector<16x256xf32>
    %cst_10 = arith.constant 0.000000e+00 : f32
    %14 = vector.broadcast %cst_10 : f32 to vector<16x256xf32>
    %15 = arith.maximumf %13, %14 : vector<16x256xf32>
    %16 = arith.truncf %15 : vector<16x256xf32> to vector<16x256xbf16>
    %c0_11 = arith.constant 0 : index
    %c0_12 = arith.constant 0 : index
    %17 = vector.load %arg4[%c0_11, %c0_12] : memref<256x512xbf16, #tpu.memory_space<vmem>>, vector<256x512xbf16>
    %c0_13 = arith.constant 0 : index
    %c384 = arith.constant 384 : index
    %18 = vector.load %arg5[%c0_13, %c384] : memref<1x1408xf32, #tpu.memory_space<vmem>>, vector<1x512xf32>
    %cst_14 = arith.constant dense<0.000000e+00> : vector<16x512xf32>
    %19 = tpu.matmul %16, %17, %cst_14 {dimension_numbers = #tpu.dot_dimension_numbers<[1], [0], [0], [1], [0, 0, 1, 1], [], []>} : vector<16x256xbf16>, vector<256x512xbf16>, vector<16x512xf32> -> vector<16x512xf32>
    %20 = vector.broadcast %18 : vector<1x512xf32> to vector<16x512xf32>
    %21 = arith.addf %19, %20 : vector<16x512xf32>
    %22 = arith.truncf %21 : vector<16x512xf32> to vector<16x512xbf16>
    %c128_15 = arith.constant 128 : index
    %c0_16 = arith.constant 0 : index
    %23 = vector.load %arg3[%c128_15, %c0_16] : memref<640x256xbf16, #tpu.memory_space<vmem>>, vector<512x256xbf16>
    %c0_17 = arith.constant 0 : index
    %c896 = arith.constant 896 : index
    %24 = vector.load %arg5[%c0_17, %c896] : memref<1x1408xf32, #tpu.memory_space<vmem>>, vector<1x256xf32>
    %cst_18 = arith.constant dense<0.000000e+00> : vector<16x256xf32>
    %25 = tpu.matmul %22, %23, %cst_18 {dimension_numbers = #tpu.dot_dimension_numbers<[1], [0], [0], [1], [0, 0, 1, 1], [], []>} : vector<16x512xbf16>, vector<512x256xbf16>, vector<16x256xf32> -> vector<16x256xf32>
    %26 = vector.broadcast %24 : vector<1x256xf32> to vector<16x256xf32>
    %27 = arith.addf %25, %26 : vector<16x256xf32>
    %cst_19 = arith.constant 0.000000e+00 : f32
    %28 = vector.broadcast %cst_19 : f32 to vector<16x256xf32>
    %29 = arith.maximumf %27, %28 : vector<16x256xf32>
    %30 = arith.truncf %29 : vector<16x256xf32> to vector<16x256xbf16>
    %c64 = arith.constant 64 : index
    %c0_20 = arith.constant 0 : index
    %31 = vector.load %arg2[%c64, %c0_20] : memref<448x128xbf16, #tpu.memory_space<vmem>>, vector<256x128xbf16>
    %c0_21 = arith.constant 0 : index
    %c1152 = arith.constant 1152 : index
    %32 = vector.load %arg5[%c0_21, %c1152] : memref<1x1408xf32, #tpu.memory_space<vmem>>, vector<1x128xf32>
    %cst_22 = arith.constant dense<0.000000e+00> : vector<16x128xf32>
    %33 = tpu.matmul %30, %31, %cst_22 {dimension_numbers = #tpu.dot_dimension_numbers<[1], [0], [0], [1], [0, 0, 1, 1], [], []>} : vector<16x256xbf16>, vector<256x128xbf16>, vector<16x128xf32> -> vector<16x128xf32>
    %34 = vector.broadcast %32 : vector<1x128xf32> to vector<16x128xf32>
    %35 = arith.addf %33, %34 : vector<16x128xf32>
    %cst_23 = arith.constant 0.000000e+00 : f32
    %36 = vector.broadcast %cst_23 : f32 to vector<16x128xf32>
    %37 = arith.maximumf %35, %36 : vector<16x128xf32>
    %38 = arith.truncf %37 : vector<16x128xf32> to vector<16x128xbf16>
    %c320 = arith.constant 320 : index
    %c0_24 = arith.constant 0 : index
    %39 = vector.load %arg2[%c320, %c0_24] : memref<448x128xbf16, #tpu.memory_space<vmem>>, vector<128x128xbf16>
    %c0_25 = arith.constant 0 : index
    %c1280 = arith.constant 1280 : index
    %40 = vector.load %arg5[%c0_25, %c1280] : memref<1x1408xf32, #tpu.memory_space<vmem>>, vector<1x128xf32>
    %cst_26 = arith.constant dense<0.000000e+00> : vector<16x128xf32>
    %41 = tpu.matmul %38, %39, %cst_26 {dimension_numbers = #tpu.dot_dimension_numbers<[1], [0], [0], [1], [0, 0, 1, 1], [], []>} : vector<16x128xbf16>, vector<128x128xbf16>, vector<16x128xf32> -> vector<16x128xf32>
    %42 = vector.broadcast %40 : vector<1x128xf32> to vector<16x128xf32>
    %43 = arith.addf %41, %42 : vector<16x128xf32>
    %cst_27 = arith.constant dense<0xFF800000> : vector<16xf32>
    %44 = vector.multi_reduction <maximumf>, %43, %cst_27 [1] : vector<16x128xf32> to vector<16xf32>
    %45 = vector.shape_cast %44 : vector<16xf32> to vector<16x1xf32>
    %46 = vector.broadcast %45 : vector<16x1xf32> to vector<16x128xf32>
    %47 = arith.subf %43, %46 : vector<16x128xf32>
    %48 = math.exp %47 : vector<16x128xf32>
    %cst_28 = arith.constant dense<0.000000e+00> : vector<16xf32>
    %49 = vector.multi_reduction <add>, %48, %cst_28 [1] : vector<16x128xf32> to vector<16xf32>
    %50 = vector.shape_cast %49 : vector<16xf32> to vector<16x1xf32>
    %51 = tpu.reciprocal %50 {approx = true} : vector<16x1xf32> -> vector<16x1xf32>
    %52 = arith.mulf %50, %51 : vector<16x1xf32>
    %cst_29 = arith.constant 2.000000e+00 : f32
    %53 = vector.broadcast %cst_29 : f32 to vector<16x1xf32>
    %54 = arith.subf %53, %52 : vector<16x1xf32>
    %55 = arith.mulf %51, %54 : vector<16x1xf32>
    %56 = arith.mulf %50, %55 : vector<16x1xf32>
    %cst_30 = arith.constant 2.000000e+00 : f32
    %57 = vector.broadcast %cst_30 : f32 to vector<16x1xf32>
    %58 = arith.subf %57, %56 : vector<16x1xf32>
    %59 = arith.mulf %55, %58 : vector<16x1xf32>
    %60 = vector.broadcast %59 : vector<16x1xf32> to vector<16x128xf32>
    %61 = arith.mulf %48, %60 : vector<16x128xf32>
    %c0_31 = arith.constant 0 : index
    %c0_32 = arith.constant 0 : index
    %62 = vector.load %arg6[%c0_31, %c0_32] : memref<16x128xf32, #tpu.memory_space<vmem>>, vector<16x128xf32>
    tpu.vector_store %arg6[%c0_31, %c0_32], %61 {strides = array<i32>} : memref<16x128xf32, #tpu.memory_space<vmem>>, vector<16x128xf32>,
    return
  }
  func.func @transform_0(%arg0: i32) -> (i32, i32) {
    %c0_i32 = arith.constant 0 : i32
    %c0_i32_0 = arith.constant 0 : i32
    return %arg0, %c0_i32 : i32, i32
  }
  func.func @transform_1(%arg0: i32) -> (i32, i32) {
    %c0_i32 = arith.constant 0 : i32
    %c0_i32_0 = arith.constant 0 : i32
    %c0_i32_1 = arith.constant 0 : i32
    return %c0_i32, %c0_i32_0 : i32, i32
  }
  func.func @transform_2(%arg0: i32) -> (i32, i32) {
    %c0_i32 = arith.constant 0 : i32
    %c0_i32_0 = arith.constant 0 : i32
    %c0_i32_1 = arith.constant 0 : i32
    return %c0_i32, %c0_i32_0 : i32, i32
  }
  func.func @transform_3(%arg0: i32) -> (i32, i32) {
    %c0_i32 = arith.constant 0 : i32
    %c0_i32_0 = arith.constant 0 : i32
    %c0_i32_1 = arith.constant 0 : i32
    return %c0_i32, %c0_i32_0 : i32, i32
  }
  func.func @transform_4(%arg0: i32) -> (i32, i32) {
    %c0_i32 = arith.constant 0 : i32
    %c0_i32_0 = arith.constant 0 : i32
    %c0_i32_1 = arith.constant 0 : i32
    return %c0_i32, %c0_i32_0 : i32, i32
  }
  func.func @transform_5(%arg0: i32) -> (i32, i32) {
    %c0_i32 = arith.constant 0 : i32
    %c0_i32_0 = arith.constant 0 : i32
    return %arg0, %c0_i32 : i32, i32
  }
}

</mosaic_0001>

<bundles_post_ra>
// kernel: simulator_reward.1
= control target key start
LH: loop header
LB: loop body
LE: loop exit
PB: predicated region body
PF: predicated region fallthrough
CT: control target
= control target key end

     0   :  { %10 = vsyncpa [#allocation3], 0  ;;  %s2310_s0 = inlined_call_operand.vmem [shape: bf16[16,64], index: 0, kind: input, shape index: {}]   ;;  %s2311_s1 = inlined_call_operand.hbm [shape: bf16[448,128], index: 1, kind: input, shape index: {}]   ;;  %s2312_s2 = inlined_call_operand.hbm [shape: bf16[640,256], index: 2, kind: input, shape index: {}]   ;;  %s2313_s3 = inlined_call_operand.hbm [shape: bf16[256,512], index: 3, kind: input, shape index: {}]   ;;  %s2314_s4 = inlined_call_operand.vmem [shape: f32[1,1408], index: 4, kind: input, shape index: {}]   ;;  %s2315_s5 = inlined_call_operand.vmem [shape: f32[16,128], index: 5, kind: output, shape index: {}]  }
   0x1   :  { %11 = vsyncpa [#allocation5], 0  ;;  %s2200_s18 = smov [#allocation4]  }
   0x2   :  { %s31_s19 = sshll.u32 %s2200_s18, 4  ;;  %s32_s19 = int_to_ptr.vmem [resolvable:$true] %s31_s19 }
   0x3   :  { %s2144_s20 = scalar_lea.vmem %s32_s19, 10240  ;;  %p2149_p1 = scmp.lt.s32.totalorder %s32_s19, %s32_s19 }
   0x4   :  { %p2145_p0 = scmp.ne.s32.totalorder %s32_s19, %s2144_s20  ;;  %p2150_p2 = scmp.lt.s32.totalorder %s2144_s20, %s2144_s20 }
   0x6   :  { %p2151_p3 = por %p2150_p2, %p2149_p1 }
   0x8   :  { %p2152_p4 = pnand %p2151_p3, %p2145_p0 }
   0xa   :  { %2155 = shalt.err (!%p2152_p4)
}
   0xb   :  { %s2201_s21 = smov 128   ;;  %s2202_s22 = smov 8  }
   0xc   :  { %37 = dma.hbm_to_vmem [thread:$0]  %s2312_s2, 10240, %s32_s19, [#allocation5], %s2201_s21, %s2201_s21, %s2202_s22  }
   0xd   :  { %s2203_s25 = smov [#allocation2]  }
   0xe   :  { %s19_s26 = sshll.u32 %s2203_s25, 4  ;;  %s20_s26 = int_to_ptr.vmem [resolvable:$true] %s19_s26 }
   0xf   :  { %s2164_s27 = scalar_lea.vmem %s20_s26, 3584  ;;  %p2169_p6 = scmp.lt.s32.totalorder %s20_s26, %s20_s26 }
  0x10   :  { %p2165_p5 = scmp.ne.s32.totalorder %s20_s26, %s2164_s27  ;;  %p2170_p7 = scmp.lt.s32.totalorder %s2164_s27, %s2164_s27 }
  0x12   :  { %p2171_p8 = por %p2170_p7, %p2169_p6 }
  0x14   :  { %p2172_p9 = pnand %p2171_p8, %p2165_p5 }
  0x16   :  { %2175 = shalt.err (!%p2172_p9)
}
  0x17   :  { %s2204_s28 = smov 64   ;;  %s2205_s29 = smov 4  }
  0x18   :  { %25 = dma.hbm_to_vmem [thread:$0]  %s2311_s1, 3584, %s20_s26, [#allocation3], %s2204_s28, %s2204_s28, %s2205_s29  }
  0x19   :  { %s2206_s7 = smov [#allocation6]  }
  0x1a   :  { %s43_s8 = sshll.u32 %s2206_s7, 4  ;;  %s44_s8 = int_to_ptr.vmem [resolvable:$true] %s43_s8 }
  0x1b   :  { %s2184_s2 = scalar_lea.vmem %s44_s8, 8192  ;;  %p2189_p11 = scmp.lt.s32.totalorder %s44_s8, %s44_s8 }
  0x1c   :  { %p2185_p10 = scmp.ne.s32.totalorder %s44_s8, %s2184_s2  ;;  %p2190_p12 = scmp.lt.s32.totalorder %s2184_s2, %s2184_s2 }
  0x1e   :  { %p2191_p13 = por %p2190_p12, %p2189_p11 }
  0x20   :  { %p2192_p0 = pnand %p2191_p13, %p2185_p10 }
  0x22   :  { %2195 = shalt.err (!%p2192_p0)
}
  0x23   :  { %s2207_s9 = smov 256   ;;  %s2208_s10 = smov 16  }
  0x24   :  { %49 = dma.hbm_to_vmem [thread:$0]  %s2313_s3, 8192, %s44_s8, [#allocation5], %s2207_s9, %s2207_s9, %s2208_s10  }
  0x25   :  { %2196 = dma.done.wait [#allocation3], 3584  }
  0x26   :  { %2197 = vsyncadd [#allocation3], 4294963712 }
  0x27   :  { %2198 = dma.done.wait [#allocation5], 18432  }
  0x28   :  { %2199 = vsyncadd [#allocation5], 4294948864  ;;  %v2209_v0 = vmov 0.0   ;;  %vm2210_vm0 = vmmov 0   ;;  %v1883_v1 = vld [vmem:[#allocation2 + $0x18] sm:$0xff]   ;;  %v1884_v2 = vld [vmem:[#allocation2 + $0x10] sm:$0xff]  }
  0x29   :  { %1839 = vmatprep.subr.bf16.mxu0 %v2209_v0  ;;  %1847 = vmatprep.mubr.msk.bf16.mxu0 %vm2210_vm0, %v2209_v0  ;;  %v1885_v3 = vld [vmem:[#allocation2 + $0x8] sm:$0xff]   ;;  %v1888_v4 = vld [vmem:[#allocation4 + $0x74] ss:$8 sps:$4 sm:$0xff]   ;;  %v1890_v5 = vld [vmem:[#allocation4 + $0x70] ss:$8 sps:$4 sm:$0xff]   ;;  %vm108_vm1 = vcmask 523264  }
  0x2a   :  { %1840 = vmatpush3.bf16.msra.mxu0 %v1883_v1  ;;  %264 = vmatprep.subr.bf16.mxu1 %v1888_v4  ;;  %v1891_v6 = vld [vmem:[#allocation4 + $0x64] ss:$8 sps:$4 sm:$0xff]   ;;  %v1893_v7 = vld [vmem:[#allocation4 + $0x60] ss:$8 sps:$4 sm:$0xff]   ;;  %v1894_v8 = vld [vmem:[#allocation4 + $0x54] ss:$8 sps:$4 sm:$0xff]  }
  0x2b   :  { %1841 = vmatprep.subr.bf16.mxu0 %v2209_v0  ;;  %265 = vmatpush1.bf16.msra.mxu1 %v1890_v5  ;;  %v1886_v9 = vld [vmem:[#allocation2] sm:$0xff]   ;;  %v1896_v11 = vld [vmem:[#allocation4 + $0x50] ss:$8 sps:$4 sm:$0xff]   ;;  %v1900_v14 = vld [vmem:[#allocation4 + $0x34] ss:$8 sps:$4 sm:$0xff]   ;;  %v2211_v22 = vmov 0  }
  0x2c   :  { %266 = vmatprep.subr.bf16.mxu1 %v1891_v6  ;;  %v1887_v10 = vld [vmem:[%s2310_s0] sm:$0xff]   ;;  %v1902_v15 = vld [vmem:[#allocation4 + $0x30] ss:$8 sps:$4 sm:$0xff]   ;;  %v1906_v18 = vld [vmem:[#allocation4 + $0x14] ss:$8 sps:$4 sm:$0xff]   ;;  %296 = vmatprep.mubr.bf16.mxu1 %v2211_v22 }
  0x2d   :  { %v1897_v12 = vld [vmem:[#allocation4 + $0x44] ss:$8 sps:$4 sm:$0xff]   ;;  %v1899_v13 = vld [vmem:[#allocation4 + $0x40] ss:$8 sps:$4 sm:$0xff]   ;;  %v1908_v19 = vld [vmem:[#allocation4 + $0x10] ss:$8 sps:$4 sm:$0xff]  }
  0x2e   :  { %1842 = vmatpush3.bf16.msra.mxu0 %v1884_v2  ;;  %v1903_v16 = vld [vmem:[#allocation4 + $0x24] ss:$8 sps:$4 sm:$0xff]   ;;  %v1905_v17 = vld [vmem:[#allocation4 + $0x20] ss:$8 sps:$4 sm:$0xff]  }
  0x2f   :  { %1843 = vmatprep.subr.bf16.mxu0 %v2209_v0  ;;  %267 = vmatpush1.bf16.msra.mxu1 %v1893_v7  ;;  %v1909_v20 = vld [vmem:[#allocation4 + $0x4] ss:$8 sps:$4 sm:$0xff]   ;;  %v1911_v21 = vld [vmem:[#allocation4] ss:$8 sps:$4 sm:$0xff]  }
  0x30   :  { %268 = vmatprep.subr.bf16.mxu1 %v1894_v8  ;;  %v1912_v23 = vld [vmem:[#allocation6 + $0xe0] ss:$16 sps:$4 sm:$0xff]   ;;  %v1914_v24 = vld [vmem:[#allocation6 + $0xe4] ss:$16 sps:$4 sm:$0xff]   ;;  %v1917_v25 = vld [vmem:[#allocation6 + $0xec] ss:$16 sps:$4 sm:$0xff]  }
  0x31   :  { %v1920_v26 = vld [vmem:[#allocation6 + $0xc4] ss:$16 sps:$4 sm:$0xff]   ;;  %v1918_v27 = vld [vmem:[#allocation6 + $0xc0] ss:$16 sps:$4 sm:$0xff]   ;;  %v1915_v59 = vld [vmem:[#allocation6 + $0xe8] ss:$16 sps:$4 sm:$0xff]  }
  0x32   :  { %1844 = vmatpush3.bf16.msra.mxu0 %v1885_v3  ;;  %v1926_v28 = vld [vmem:[#allocation6 + $0xa4] ss:$16 sps:$4 sm:$0xff]   ;;  %v1924_v29 = vld [vmem:[#allocation6 + $0xa0] ss:$16 sps:$4 sm:$0xff]   ;;  %v1923_v61 = vld [vmem:[#allocation6 + $0xcc] ss:$16 sps:$4 sm:$0xff]  }
  0x33   :  { %1845 = vmatprep.subr.bf16.mxu0 %v2209_v0  ;;  %269 = vmatpush1.bf16.msra.mxu1 %v1896_v11  ;;  %v1932_v30 = vld [vmem:[#allocation6 + $0x84] ss:$16 sps:$4 sm:$0xff]   ;;  %v1930_v31 = vld [vmem:[#allocation6 + $0x80] ss:$16 sps:$4 sm:$0xff]   ;;  %v1921_v62 = vld [vmem:[#allocation6 + $0xc8] ss:$16 sps:$4 sm:$0xff]  }
  0x34   :  { %270 = vmatprep.subr.bf16.mxu1 %v1897_v12  ;;  %v1938_v32 = vld [vmem:[#allocation6 + $0x64] ss:$16 sps:$4 sm:$0xff]   ;;  %v1936_v33 = vld [vmem:[#allocation6 + $0x60] ss:$16 sps:$4 sm:$0xff]   ;;  %v1929_v63 = vld [vmem:[#allocation6 + $0xac] ss:$16 sps:$4 sm:$0xff]  }
  0x35   :  { %v1944_v34 = vld [vmem:[#allocation6 + $0x44] ss:$16 sps:$4 sm:$0xff]   ;;  %v1942_v35 = vld [vmem:[#allocation6 + $0x40] ss:$16 sps:$4 sm:$0xff]   ;;  %v1927_v1 = vld [vmem:[#allocation6 + $0xa8] ss:$16 sps:$4 sm:$0xff]  }
  0x36   :  { %1846 = vmatpush3.bf16.msra.mxu0 %v1886_v9  ;;  %v1950_v36 = vld [vmem:[#allocation6 + $0x24] ss:$16 sps:$4 sm:$0xff]   ;;  %v1948_v37 = vld [vmem:[#allocation6 + $0x20] ss:$16 sps:$4 sm:$0xff]   ;;  %v1935_v2 = vld [vmem:[#allocation6 + $0x8c] ss:$16 sps:$4 sm:$0xff]  }
  0x37   :  { %271 = vmatpush1.bf16.msra.mxu1 %v1899_v13  ;;  %719 = vmatprep.subr.bf16.mxu0 %v1914_v24  ;;  %v1956_v38 = vld [vmem:[#allocation6 + $0x4] ss:$16 sps:$4 sm:$0xff]   ;;  %v1954_v39 = vld [vmem:[#allocation6] ss:$16 sps:$4 sm:$0xff]   ;;  %v1933_v3 = vld [vmem:[#allocation6 + $0x88] ss:$16 sps:$4 sm:$0xff]  }
  0x38   :  { %272 = vmatprep.subr.bf16.mxu1 %v1900_v14  ;;  %v1962_v40 = vld [vmem:[#allocation6 + $0x1e4] ss:$16 sps:$4 sm:$0xff]   ;;  %v1960_v41 = vld [vmem:[#allocation6 + $0x1e0] ss:$16 sps:$4 sm:$0xff]   ;;  %v1941_v4 = vld [vmem:[#allocation6 + $0x6c] ss:$16 sps:$4 sm:$0xff]  }
  0x39   :  { %1848 = vmatmul.mubr.msk.bf16.vlgmr.msra.gmra.mxu0 %vm108_vm1, %v1887_v10  ;;  %v1968_v42 = vld [vmem:[#allocation6 + $0x1c4] ss:$16 sps:$4 sm:$0xff]   ;;  %v1966_v43 = vld [vmem:[#allocation6 + $0x1c0] ss:$16 sps:$4 sm:$0xff]   ;;  %v1939_v5 = vld [vmem:[#allocation6 + $0x68] ss:$16 sps:$4 sm:$0xff]  }
  0x3a   :  { %720 = vmatpush1.bf16.msra.mxu0 %v1912_v23  ;;  %v1974_v44 = vld [vmem:[#allocation6 + $0x1a4] ss:$16 sps:$4 sm:$0xff]   ;;  %v1972_v45 = vld [vmem:[#allocation6 + $0x1a0] ss:$16 sps:$4 sm:$0xff]   ;;  %v1947_v6 = vld [vmem:[#allocation6 + $0x4c] ss:$16 sps:$4 sm:$0xff]  }
  0x3b   :  { %273 = vmatpush1.bf16.msra.mxu1 %v1902_v15  ;;  %721 = vmatprep.subr.bf16.mxu0 %v1920_v26  ;;  %v1980_v46 = vld [vmem:[#allocation6 + $0x184] ss:$16 sps:$4 sm:$0xff]   ;;  %v1978_v47 = vld [vmem:[#allocation6 + $0x180] ss:$16 sps:$4 sm:$0xff]   ;;  %v1945_v7 = vld [vmem:[#allocation6 + $0x48] ss:$16 sps:$4 sm:$0xff]  }
  0x3c   :  { %274 = vmatprep.subr.bf16.mxu1 %v1903_v16  ;;  %v1986_v48 = vld [vmem:[#allocation6 + $0x164] ss:$16 sps:$4 sm:$0xff]   ;;  %v1984_v49 = vld [vmem:[#allocation6 + $0x160] ss:$16 sps:$4 sm:$0xff]   ;;  %v1953_v8 = vld [vmem:[#allocation6 + $0x2c] ss:$16 sps:$4 sm:$0xff]  }
  0x3d   :  { %v1626_v50 = vld [vmem:[%s2314_s4] ss:$0 sm:$0xff]  ;;  %v1951_v9 = vld [vmem:[#allocation6 + $0x28] ss:$16 sps:$4 sm:$0xff]   ;;  %v1959_v10 = vld [vmem:[#allocation6 + $0xc] ss:$16 sps:$4 sm:$0xff]  }
  0x3e   :  { %722 = vmatpush1.bf16.msra.mxu0 %v1918_v27  ;;  %v1957_v11 = vld [vmem:[#allocation6 + $0x8] ss:$16 sps:$4 sm:$0xff]   ;;  %v1965_v12 = vld [vmem:[#allocation6 + $0x1ec] ss:$16 sps:$4 sm:$0xff]   ;;  %v1992_v22 = vld [vmem:[#allocation6 + $0x144] ss:$16 sps:$4 sm:$0xff]  }
  0x3f   :  { %275 = vmatpush1.bf16.msra.mxu1 %v1905_v17  ;;  %723 = vmatprep.subr.bf16.mxu0 %v1926_v28  ;;  %v1963_v13 = vld [vmem:[#allocation6 + $0x1e8] ss:$16 sps:$4 sm:$0xff]   ;;  %v1971_v14 = vld [vmem:[#allocation6 + $0x1cc] ss:$16 sps:$4 sm:$0xff]   ;;  %v1990_v24 = vld [vmem:[#allocation6 + $0x140] ss:$16 sps:$4 sm:$0xff]  }
  0x40   :  { %276 = vmatprep.subr.bf16.mxu1 %v1906_v18  ;;  %v1969_v15 = vld [vmem:[#allocation6 + $0x1c8] ss:$16 sps:$4 sm:$0xff]   ;;  %v1977_v16 = vld [vmem:[#allocation6 + $0x1ac] ss:$16 sps:$4 sm:$0xff]   ;;  %v1998_v26 = vld [vmem:[#allocation6 + $0x124] ss:$16 sps:$4 sm:$0xff]  }
  0x41   :  { %v1975_v17 = vld [vmem:[#allocation6 + $0x1a8] ss:$16 sps:$4 sm:$0xff]   ;;  %v1983_v18 = vld [vmem:[#allocation6 + $0x18c] ss:$16 sps:$4 sm:$0xff]   ;;  %v1996_v28 = vld [vmem:[#allocation6 + $0x120] ss:$16 sps:$4 sm:$0xff]  }
  0x42   :  { %724 = vmatpush1.bf16.msra.mxu0 %v1924_v29  ;;  %v1995_v23 = vld [vmem:[#allocation6 + $0x14c] ss:$16 sps:$4 sm:$0xff]   ;;  %v1999_v29 = vld [vmem:[#allocation6 + $0x128] ss:$16 sps:$4 sm:$0xff]  }
  0x43   :  { %277 = vmatpush1.bf16.msra.mxu1 %v1908_v19  ;;  %725 = vmatprep.subr.bf16.mxu0 %v1932_v30  ;;  %v1981_v19 = vld [vmem:[#allocation6 + $0x188] ss:$16 sps:$4 sm:$0xff]   ;;  %v2001_v27 = vld [vmem:[#allocation6 + $0x12c] ss:$16 sps:$4 sm:$0xff]   ;;  %v2004_v30 = vld [vmem:[#allocation6 + $0x104] ss:$16 sps:$4 sm:$0xff]  }
  0x44   :  { %278 = vmatprep.subr.bf16.mxu1 %v1909_v20  ;;  %v1989_v20 = vld [vmem:[#allocation6 + $0x16c] ss:$16 sps:$4 sm:$0xff]  }
  0x46   :  { %726 = vmatpush1.bf16.msra.mxu0 %v1930_v31  ;;  %v2007_v31 = vld [vmem:[#allocation6 + $0x10c] ss:$16 sps:$4 sm:$0xff]  }
  0x47   :  { %279 = vmatpush1.bf16.msra.mxu1 %v1911_v21  ;;  %727 = vmatprep.subr.bf16.mxu0 %v1938_v32  ;;  %v1987_v21 = vld [vmem:[#allocation6 + $0x168] ss:$16 sps:$4 sm:$0xff]   ;;  %v2002_v32 = vld [vmem:[#allocation6 + $0x100] ss:$16 sps:$4 sm:$0xff]  }
  0x48   :  { %762 = vmatprep.subr.bf16.mxu1 %v1917_v25  ;;  %v1993_v25 = vld [vmem:[#allocation6 + $0x148] ss:$16 sps:$4 sm:$0xff]  }
  0x4a   :  { %728 = vmatpush1.bf16.msra.mxu0 %v1936_v33  ;;  %v2005_v33 = vld [vmem:[#allocation6 + $0x108] ss:$16 sps:$4 sm:$0xff]  }
  0x4b   :  { %729 = vmatprep.subr.bf16.mxu0 %v1944_v34  ;;  %v2010_v34 = vld [vmem:[#allocation4 + $0xf4] ss:$8 sps:$4 sm:$0xff]  }
  0x4e   :  { %730 = vmatpush1.bf16.msra.mxu0 %v1942_v35  ;;  %v2013_v35 = vld [vmem:[#allocation4 + $0x1f4] ss:$8 sps:$4 sm:$0xff]  }
  0x4f   :  { %731 = vmatprep.subr.bf16.mxu0 %v1950_v36  ;;  %v174_v36 = vlaneseq }
  0x52   :  { %732 = vmatpush1.bf16.msra.mxu0 %v1948_v37  ;;  %v2263_v37 = vshrl.u32 %v174_v36, 7  ;;  %v2076_v36 = vld [vmem:[#allocation4 + $0x144] ss:$8 sps:$4 sm:$0xff]  }
  0x53   :  { %733 = vmatprep.subr.bf16.mxu0 %v1956_v38 }
  0x54   :  { %v2266_v38 = vsub.s32 1, %v2263_v37 }
  0x56   :  { %734 = vmatpush1.bf16.msra.mxu0 %v1954_v39  ;;  %v2269_v39 = vsub.s32 0, %v2263_v37 }
  0x57   :  { %735 = vmatprep.subr.bf16.mxu0 %v1962_v40  ;;  %v172_v40 = vld [vmem:[%s2314_s4 + $0x1] sm:$0x3] }
  0x5a   :  { %736 = vmatpush2.bf16.msra.mxu0 %v1960_v41 }
  0x5b   :  { %737 = vmatprep.subr.bf16.mxu0 %v1968_v42  ;;  %v181_v42 = vrot.slane %v172_v40, %v2266_v38 }
  0x5e   :  { %738 = vmatpush2.bf16.msra.mxu0 %v1966_v43  ;;  %v177_v43 = vrot.slane %v172_v40, %v2269_v39  ;;  %v2079_v40 = vld [vmem:[#allocation4 + $0x244] ss:$8 sps:$4 sm:$0xff]  }
  0x5f   :  { %739 = vmatprep.subr.bf16.mxu0 %v1974_v44 }
  0x62   :  { %740 = vmatpush2.bf16.msra.mxu0 %v1972_v45 }
  0x63   :  { %741 = vmatprep.subr.bf16.mxu0 %v1980_v46 }
  0x66   :  { %742 = vmatpush2.bf16.msra.mxu0 %v1978_v47 }
  0x67   :  { %743 = vmatprep.subr.bf16.mxu0 %v1986_v48 }
  0x6a   :  { %744 = vmatpush2.bf16.msra.mxu0 %v1984_v49 }
  0x6b   :  { %745 = vmatprep.subr.bf16.mxu0 %v1992_v22  ;;  %v2050_v22 = vld [vmem:[#allocation4 + $0x80] ss:$8 sps:$4 sm:$0xff]  }
  0x6e   :  { %746 = vmatpush2.bf16.msra.mxu0 %v1990_v24  ;;  %v2058_v24 = vld [vmem:[#allocation4 + $0x174] ss:$8 sps:$4 sm:$0xff]  }
  0x6f   :  { %747 = vmatprep.subr.bf16.mxu0 %v1998_v26  ;;  %v2056_v26 = vld [vmem:[#allocation4 + $0x170] ss:$8 sps:$4 sm:$0xff]  }
  0x72   :  { %748 = vmatpush2.bf16.msra.mxu0 %v1996_v28  ;;  %v2064_v28 = vld [vmem:[#allocation4 + $0x164] ss:$8 sps:$4 sm:$0xff]  }
  0x73   :  { %749 = vmatprep.subr.bf16.mxu0 %v2004_v30  ;;  %v2062_v30 = vld [vmem:[#allocation4 + $0x160] ss:$8 sps:$4 sm:$0xff]  }
  0x76   :  { %750 = vmatpush2.bf16.msra.mxu0 %v2002_v32  ;;  %v2070_v32 = vld [vmem:[#allocation4 + $0x154] ss:$8 sps:$4 sm:$0xff]  }
  0x77   :  { %1205 = vmatprep.subr.bf16.mxu0 %v2010_v34  ;;  %v2068_v34 = vld [vmem:[#allocation4 + $0x150] ss:$8 sps:$4 sm:$0xff]  }
  0xf9   :  { %v146_v51 = vpop.f32.mrf.mxu0 }
  0xfa   :  { %v147_v53 = vadd.f32 %v1626_v50, %v146_v51 }
  0xfb   :  { %v1849_v52 = vpop.f32.mrf.mxu0 }
  0xfc   :  { %v153_v57 = vmax.f32 %v147_v53, 0.0 }
  0xfd   :  { %v149_v54 = vpop.f32.mrf.mxu0 }
  0xfe   :  { %v150_v55 = vadd.f32 %v1626_v50, %v149_v54 }
  0xff   :  { %v1850_v56 = vpop.f32.mrf.mxu0 }
 0x100   :  { %v154_v58 = vmax.f32 %v150_v55, 0.0  ;;  %v2008_v56 = vld [vmem:[#allocation4 + $0xf0] ss:$8 sps:$4 sm:$0xff]  }
 0x102   :  { %v155_v60 = vpack.c.bf16 %v154_v58, %v153_v57  ;;  %v2011_v57 = vld [vmem:[#allocation4 + $0x1f0] ss:$8 sps:$4 sm:$0xff]  }
 0x104   :  { %297 = vmatmul.mubr.bf16.vlgmr.msra.gmra.mxu1 %v155_v60  ;;  %v2019_v60 = vld [vmem:[#allocation4 + $0x1e4] ss:$8 sps:$4 sm:$0xff]  }
 0x105   :  { %763 = vmatpush1.bf16.msra.mxu1 %v1915_v59  ;;  %v2016_v59 = vld [vmem:[#allocation4 + $0xe4] ss:$8 sps:$4 sm:$0xff]  }
 0x106   :  { %764 = vmatprep.subr.bf16.mxu1 %v1923_v61  ;;  %v2014_v61 = vld [vmem:[#allocation4 + $0xe0] ss:$8 sps:$4 sm:$0xff]  }
 0x109   :  { %765 = vmatpush1.bf16.msra.mxu1 %v1921_v62  ;;  %v2017_v62 = vld [vmem:[#allocation4 + $0x1e0] ss:$8 sps:$4 sm:$0xff]  }
 0x10a   :  { %766 = vmatprep.subr.bf16.mxu1 %v1929_v63  ;;  %v2022_v63 = vld [vmem:[#allocation4 + $0xd4] ss:$8 sps:$4 sm:$0xff]  }
 0x10d   :  { %767 = vmatpush1.bf16.msra.mxu1 %v1927_v1  ;;  %v2025_v1 = vld [vmem:[#allocation4 + $0x1d4] ss:$8 sps:$4 sm:$0xff]  }
 0x10e   :  { %768 = vmatprep.subr.bf16.mxu1 %v1935_v2  ;;  %v2020_v2 = vld [vmem:[#allocation4 + $0xd0] ss:$8 sps:$4 sm:$0xff]  }
 0x111   :  { %769 = vmatpush1.bf16.msra.mxu1 %v1933_v3  ;;  %v2023_v3 = vld [vmem:[#allocation4 + $0x1d0] ss:$8 sps:$4 sm:$0xff]  }
 0x112   :  { %770 = vmatprep.subr.bf16.mxu1 %v1941_v4  ;;  %v2028_v4 = vld [vmem:[#allocation4 + $0xc4] ss:$8 sps:$4 sm:$0xff]  }
 0x115   :  { %771 = vmatpush1.bf16.msra.mxu1 %v1939_v5  ;;  %v2031_v5 = vld [vmem:[#allocation4 + $0x1c4] ss:$8 sps:$4 sm:$0xff]  }
 0x116   :  { %772 = vmatprep.subr.bf16.mxu1 %v1947_v6  ;;  %v2026_v6 = vld [vmem:[#allocation4 + $0xc0] ss:$8 sps:$4 sm:$0xff]  }
 0x119   :  { %773 = vmatpush1.bf16.msra.mxu1 %v1945_v7  ;;  %v2029_v7 = vld [vmem:[#allocation4 + $0x1c0] ss:$8 sps:$4 sm:$0xff]  }
 0x11a   :  { %774 = vmatprep.subr.bf16.mxu1 %v1953_v8  ;;  %v2034_v8 = vld [vmem:[#allocation4 + $0xb4] ss:$8 sps:$4 sm:$0xff]  }
 0x11d   :  { %775 = vmatpush1.bf16.msra.mxu1 %v1951_v9  ;;  %v2037_v9 = vld [vmem:[#allocation4 + $0x1b4] ss:$8 sps:$4 sm:$0xff]  }
 0x11e   :  { %776 = vmatprep.subr.bf16.mxu1 %v1959_v10  ;;  %v2032_v10 = vld [vmem:[#allocation4 + $0xb0] ss:$8 sps:$4 sm:$0xff]  }
 0x121   :  { %777 = vmatpush1.bf16.msra.mxu1 %v1957_v11  ;;  %v2035_v11 = vld [vmem:[#allocation4 + $0x1b0] ss:$8 sps:$4 sm:$0xff]  }
 0x122   :  { %778 = vmatprep.subr.bf16.mxu1 %v1965_v12  ;;  %v2040_v12 = vld [vmem:[#allocation4 + $0xa4] ss:$8 sps:$4 sm:$0xff]  }
 0x125   :  { %779 = vmatpush2.bf16.msra.mxu1 %v1963_v13  ;;  %v2043_v13 = vld [vmem:[#allocation4 + $0x1a4] ss:$8 sps:$4 sm:$0xff]  }
 0x126   :  { %780 = vmatprep.subr.bf16.mxu1 %v1971_v14  ;;  %v2038_v14 = vld [vmem:[#allocation4 + $0xa0] ss:$8 sps:$4 sm:$0xff]  }
 0x129   :  { %781 = vmatpush2.bf16.msra.mxu1 %v1969_v15  ;;  %v2041_v15 = vld [vmem:[#allocation4 + $0x1a0] ss:$8 sps:$4 sm:$0xff]  }
 0x12a   :  { %782 = vmatprep.subr.bf16.mxu1 %v1977_v16  ;;  %v2046_v16 = vld [vmem:[#allocation4 + $0x94] ss:$8 sps:$4 sm:$0xff]  }
 0x12d   :  { %783 = vmatpush2.bf16.msra.mxu1 %v1975_v17  ;;  %v2049_v17 = vld [vmem:[#allocation4 + $0x194] ss:$8 sps:$4 sm:$0xff]  }
 0x12e   :  { %784 = vmatprep.subr.bf16.mxu1 %v1983_v18  ;;  %v2044_v18 = vld [vmem:[#allocation4 + $0x90] ss:$8 sps:$4 sm:$0xff]  }
 0x131   :  { %785 = vmatpush2.bf16.msra.mxu1 %v1981_v19  ;;  %v2047_v19 = vld [vmem:[#allocation4 + $0x190] ss:$8 sps:$4 sm:$0xff]  }
 0x132   :  { %786 = vmatprep.subr.bf16.mxu1 %v1989_v20  ;;  %v2052_v20 = vld [vmem:[#allocation4 + $0x84] ss:$8 sps:$4 sm:$0xff]  }
 0x135   :  { %787 = vmatpush2.bf16.msra.mxu1 %v1987_v21  ;;  %v2055_v21 = vld [vmem:[#allocation4 + $0x184] ss:$8 sps:$4 sm:$0xff]  }
 0x136   :  { %788 = vmatprep.subr.bf16.mxu1 %v1995_v23  ;;  %v2053_v23 = vld [vmem:[#allocation4 + $0x180] ss:$8 sps:$4 sm:$0xff]  }
 0x139   :  { %789 = vmatpush2.bf16.msra.mxu1 %v1993_v25  ;;  %v2061_v25 = vld [vmem:[#allocation4 + $0x274] ss:$8 sps:$4 sm:$0xff]  }
 0x13a   :  { %790 = vmatprep.subr.bf16.mxu1 %v2001_v27  ;;  %v2059_v27 = vld [vmem:[#allocation4 + $0x270] ss:$8 sps:$4 sm:$0xff]  }
 0x13d   :  { %791 = vmatpush2.bf16.msra.mxu1 %v1999_v29  ;;  %v2067_v29 = vld [vmem:[#allocation4 + $0x264] ss:$8 sps:$4 sm:$0xff]  }
 0x13e   :  { %792 = vmatprep.subr.bf16.mxu1 %v2007_v31  ;;  %v2065_v31 = vld [vmem:[#allocation4 + $0x260] ss:$8 sps:$4 sm:$0xff]  }
 0x141   :  { %793 = vmatpush2.bf16.msra.mxu1 %v2005_v33  ;;  %v2073_v33 = vld [vmem:[#allocation4 + $0x254] ss:$8 sps:$4 sm:$0xff]  }
 0x142   :  { %1248 = vmatprep.subr.bf16.mxu1 %v2013_v35  ;;  %v2071_v35 = vld [vmem:[#allocation4 + $0x250] ss:$8 sps:$4 sm:$0xff]  }
 0x1c4   :  { %v298_v41 = vpop.f32.mrf.mxu1 }
 0x1c5   :  { %v299_v48 = vadd.f32 %v298_v41, %v177_v43  ;;  %v2074_v41 = vld [vmem:[#allocation4 + $0x140] ss:$8 sps:$4 sm:$0xff]  }
 0x1c6   :  { %v300_v44 = vpop.f32.mrf.mxu1 }
 0x1c7   :  { %v301_v46 = vadd.f32 %v300_v44, %v181_v42  ;;  %v307_v54 = vmax.f32 %v299_v48, 0.0  ;;  %v2085_v44 = vld [vmem:[#allocation4 + $0x234] ss:$8 sps:$4 sm:$0xff]   ;;  %v2091_v48 = vld [vmem:[#allocation4 + $0x224] ss:$8 sps:$4 sm:$0xff]  }
 0x1c8   :  { %v302_v45 = vpop.f32.mrf.mxu1 }
 0x1c9   :  { %v303_v47 = vadd.f32 %v302_v45, %v177_v43  ;;  %v308_v52 = vmax.f32 %v301_v46, 0.0  ;;  %v2082_v43 = vld [vmem:[#allocation4 + $0x134] ss:$8 sps:$4 sm:$0xff]   ;;  %v2080_v45 = vld [vmem:[#allocation4 + $0x130] ss:$8 sps:$4 sm:$0xff]  }
 0x1ca   :  { %v304_v49 = vpop.f32.mrf.mxu1  ;;  %v2083_v46 = vld [vmem:[#allocation4 + $0x230] ss:$8 sps:$4 sm:$0xff]  }
 0x1cb   :  { %v305_v50 = vadd.f32 %v304_v49, %v181_v42  ;;  %v309_v51 = vmax.f32 %v303_v47, 0.0  ;;  %v2077_v42 = vld [vmem:[#allocation4 + $0x240] ss:$8 sps:$4 sm:$0xff]   ;;  %v2088_v47 = vld [vmem:[#allocation4 + $0x124] ss:$8 sps:$4 sm:$0xff]  }
 0x1cc   :  { %v2086_v49 = vld [vmem:[#allocation4 + $0x120] ss:$8 sps:$4 sm:$0xff]  }
 0x1cd   :  { %v310_v53 = vmax.f32 %v305_v50, 0.0  ;;  %v311_v58 = vpack.c.bf16 %v309_v51, %v307_v54  ;;  %v2089_v50 = vld [vmem:[#allocation4 + $0x220] ss:$8 sps:$4 sm:$0xff]   ;;  %v2094_v51 = vld [vmem:[#allocation4 + $0x114] ss:$8 sps:$4 sm:$0xff]  }
 0x1ce   :  { %v2095_v54 = vld [vmem:[#allocation4 + $0x210] ss:$8 sps:$4 sm:$0xff]  }
 0x1cf   :  { %v312_v55 = vpack.c.bf16 %v310_v53, %v308_v52  ;;  %v2097_v52 = vld [vmem:[#allocation4 + $0x214] ss:$8 sps:$4 sm:$0xff]   ;;  %v2092_v53 = vld [vmem:[#allocation4 + $0x110] ss:$8 sps:$4 sm:$0xff]  }
 0x1d1   :  { %751 = vmatprep.mubr.bf16.mxu0 %v312_v55  ;;  %794 = vmatprep.mubr.bf16.mxu1 %v312_v55  ;;  %v2100_v55 = vld [vmem:[#allocation4 + $0x104] ss:$8 sps:$4 sm:$0xff]  }
 0x1d2   :  { %752 = vmatmul.mubr.bf16.vlgmr.msra.gmra.mxu0 %v311_v58  ;;  %795 = vmatmul.mubr.bf16.vlgmr.msra.gmra.mxu1 %v311_v58  ;;  %v2101_v58 = vld [vmem:[#allocation4 + $0x200] ss:$8 sps:$4 sm:$0xff]  }
 0x1d3   :  { %1206 = vmatpush1.bf16.msra.mxu0 %v2008_v56  ;;  %1249 = vmatpush1.bf16.msra.mxu1 %v2011_v57  ;;  %v2103_v56 = vld [vmem:[#allocation4 + $0x204] ss:$8 sps:$4 sm:$0xff]   ;;  %v2098_v57 = vld [vmem:[#allocation4 + $0x100] ss:$8 sps:$4 sm:$0xff]  }
 0x1d4   :  { %1207 = vmatprep.subr.bf16.mxu0 %v2016_v59  ;;  %1250 = vmatprep.subr.bf16.mxu1 %v2019_v60  ;;  %v2104_v59 = vld [vmem:[#allocation2 + $0x98] sm:$0xff]   ;;  %v393_v60 = vsub.s32 3, %v2263_v37 }
 0x1d7   :  { %1208 = vmatpush1.bf16.msra.mxu0 %v2014_v61  ;;  %1251 = vmatpush1.bf16.msra.mxu1 %v2017_v62  ;;  %v389_v62 = vsub.s32 2, %v2263_v37 }
 0x1d8   :  { %1209 = vmatprep.subr.bf16.mxu0 %v2022_v63  ;;  %1252 = vmatprep.subr.bf16.mxu1 %v2025_v1  ;;  %v377_v1 = vld [vmem:[%s2314_s4 + $0x3] sm:$0xf] }
 0x1db   :  { %1210 = vmatpush1.bf16.msra.mxu0 %v2020_v2  ;;  %1253 = vmatpush1.bf16.msra.mxu1 %v2023_v3 }
 0x1dc   :  { %1211 = vmatprep.subr.bf16.mxu0 %v2028_v4  ;;  %1254 = vmatprep.subr.bf16.mxu1 %v2031_v5  ;;  %v386_v4 = vrot.slane %v377_v1, %v2266_v38  ;;  %v394_v5 = vrot.slane %v377_v1, %v393_v60 }
 0x1df   :  { %1212 = vmatpush1.bf16.msra.mxu0 %v2026_v6  ;;  %1255 = vmatpush1.bf16.msra.mxu1 %v2029_v7  ;;  %v382_v6 = vrot.slane %v377_v1, %v2269_v39  ;;  %v390_v7 = vrot.slane %v377_v1, %v389_v62 }
 0x1e0   :  { %1213 = vmatprep.subr.bf16.mxu0 %v2034_v8  ;;  %1256 = vmatprep.subr.bf16.mxu1 %v2037_v9 }
 0x1e3   :  { %1214 = vmatpush1.bf16.msra.mxu0 %v2032_v10  ;;  %1257 = vmatpush1.bf16.msra.mxu1 %v2035_v11 }
 0x1e4   :  { %1215 = vmatprep.subr.bf16.mxu0 %v2040_v12  ;;  %1258 = vmatprep.subr.bf16.mxu1 %v2043_v13 }
 0x1e7   :  { %1216 = vmatpush1.bf16.msra.mxu0 %v2038_v14  ;;  %1259 = vmatpush1.bf16.msra.mxu1 %v2041_v15 }
 0x1e8   :  { %1217 = vmatprep.subr.bf16.mxu0 %v2046_v16  ;;  %1260 = vmatprep.subr.bf16.mxu1 %v2049_v17 }
 0x1eb   :  { %1218 = vmatpush1.bf16.msra.mxu0 %v2044_v18  ;;  %1261 = vmatpush1.bf16.msra.mxu1 %v2047_v19 }
 0x1ec   :  { %1219 = vmatprep.subr.bf16.mxu0 %v2052_v20  ;;  %1262 = vmatprep.subr.bf16.mxu1 %v2055_v21  ;;  %v2105_v21 = vld [vmem:[#allocation2 + $0x58] sm:$0xff]  }
 0x1ef   :  { %1220 = vmatpush1.bf16.msra.mxu0 %v2050_v22  ;;  %1263 = vmatpush1.bf16.msra.mxu1 %v2053_v23 }
 0x1f0   :  { %1221 = vmatprep.subr.bf16.mxu0 %v2058_v24  ;;  %1264 = vmatprep.subr.bf16.mxu1 %v2061_v25  ;;  %v2106_v24 = vld [vmem:[#allocation2 + $0x90] sm:$0xff]  }
 0x1f1   :  { %v2107_v25 = vld [vmem:[#allocation2 + $0x50] sm:$0xff]  }
 0x1f3   :  { %1222 = vmatpush2.bf16.msra.mxu0 %v2056_v26  ;;  %1265 = vmatpush2.bf16.msra.mxu1 %v2059_v27  ;;  %v2108_v26 = vld [vmem:[#allocation2 + $0x88] sm:$0xff]  }
 0x1f4   :  { %1223 = vmatprep.subr.bf16.mxu0 %v2064_v28  ;;  %1266 = vmatprep.subr.bf16.mxu1 %v2067_v29  ;;  %v2109_v27 = vld [vmem:[#allocation2 + $0x48] sm:$0xff]   ;;  %v2110_v28 = vld [vmem:[#allocation2 + $0x80] sm:$0xff]  }
 0x1f5   :  { %v2111_v29 = vld [vmem:[#allocation2 + $0x40] sm:$0xff]  }
 0x1f7   :  { %1224 = vmatpush2.bf16.msra.mxu0 %v2062_v30  ;;  %1267 = vmatpush2.bf16.msra.mxu1 %v2065_v31  ;;  %v2112_v30 = vld [vmem:[#allocation2 + $0x78] sm:$0xff]  }
 0x1f8   :  { %1225 = vmatprep.subr.bf16.mxu0 %v2070_v32  ;;  %1268 = vmatprep.subr.bf16.mxu1 %v2073_v33  ;;  %v2113_v31 = vld [vmem:[#allocation2 + $0x38] sm:$0xff]   ;;  %v2114_v32 = vld [vmem:[#allocation2 + $0x70] sm:$0xff]  }
 0x1f9   :  { %v2115_v33 = vld [vmem:[#allocation2 + $0x30] sm:$0xff]  }
 0x1fb   :  { %1226 = vmatpush2.bf16.msra.mxu0 %v2068_v34  ;;  %1269 = vmatpush2.bf16.msra.mxu1 %v2071_v35  ;;  %v2116_v34 = vld [vmem:[#allocation2 + $0x68] sm:$0xff]  }
 0x1fc   :  { %1227 = vmatprep.subr.bf16.mxu0 %v2076_v36  ;;  %1270 = vmatprep.subr.bf16.mxu1 %v2079_v40  ;;  %v2117_v35 = vld [vmem:[#allocation2 + $0x28] sm:$0xff]   ;;  %v2118_v36 = vld [vmem:[#allocation2 + $0x60] sm:$0xff]  }
 0x1fd   :  { %v2119_v40 = vld [vmem:[#allocation2 + $0x20] sm:$0xff]  }
 0x1ff   :  { %1228 = vmatpush2.bf16.msra.mxu0 %v2074_v41  ;;  %1271 = vmatpush2.bf16.msra.mxu1 %v2077_v42  ;;  %v2120_v41 = vld [vmem:[#allocation2 + $0xd8] sm:$0xff]   ;;  %v2121_v42 = vld [vmem:[#allocation2 + $0xd0] sm:$0xff]  }
 0x200   :  { %1229 = vmatprep.subr.bf16.mxu0 %v2082_v43  ;;  %1272 = vmatprep.subr.bf16.mxu1 %v2085_v44  ;;  %v2122_v43 = vld [vmem:[#allocation2 + $0xc8] sm:$0xff]   ;;  %v2123_v44 = vld [vmem:[#allocation2 + $0xc0] sm:$0xff]  }
 0x203   :  { %1230 = vmatpush2.bf16.msra.mxu0 %v2080_v45  ;;  %1273 = vmatpush2.bf16.msra.mxu1 %v2083_v46  ;;  %v873_v45 = vld [vmem:[%s2314_s4 + $0x7] sm:$0x3] }
 0x204   :  { %1231 = vmatprep.subr.bf16.mxu0 %v2088_v47  ;;  %1274 = vmatprep.subr.bf16.mxu1 %v2091_v48  ;;  %v882_v46 = vrot.slane %v873_v45, %v2266_v38  ;;  %v878_v47 = vrot.slane %v873_v45, %v2269_v39 }
 0x207   :  { %1232 = vmatpush2.bf16.msra.mxu0 %v2086_v49  ;;  %1275 = vmatpush2.bf16.msra.mxu1 %v2089_v50 }
 0x208   :  { %1233 = vmatprep.subr.bf16.mxu0 %v2094_v51  ;;  %1276 = vmatprep.subr.bf16.mxu1 %v2097_v52 }
 0x20b   :  { %1234 = vmatpush2.bf16.msra.mxu0 %v2092_v53  ;;  %1277 = vmatpush2.bf16.msra.mxu1 %v2095_v54 }
 0x20c   :  { %1235 = vmatprep.subr.bf16.mxu0 %v2100_v55  ;;  %1278 = vmatprep.subr.bf16.mxu1 %v2103_v56 }
 0x20f   :  { %1236 = vmatpush2.bf16.msra.mxu0 %v2098_v57  ;;  %1279 = vmatpush2.bf16.msra.mxu1 %v2101_v58 }
 0x210   :  { %1851 = vmatprep.subr.bf16.mxu1 %v2209_v0  ;;  %1808 = vmatprep.subr.bf16.mxu0 %v2104_v59 }
 0x292   :  { %v753_v61 = vpop.f32.mrf.mxu0  ;;  %v796_v63 = vpop.f32.mrf.mxu1 }
 0x293   :  { %v754_v17 = vadd.f32 %v753_v61, %v382_v6  ;;  %v797_v18 = vadd.f32 %v796_v63, %v390_v7 }
 0x294   :  { %v755_v2 = vpop.f32.mrf.mxu0  ;;  %v798_v3 = vpop.f32.mrf.mxu1 }
 0x295   :  { %v756_v37 = vadd.f32 %v755_v2, %v386_v4  ;;  %v799_v14 = vadd.f32 %v798_v3, %v394_v5 }
 0x296   :  { %v757_v8 = vpop.f32.mrf.mxu0  ;;  %v800_v9 = vpop.f32.mrf.mxu1 }
 0x297   :  { %v758_v10 = vadd.f32 %v757_v8, %v382_v6  ;;  %v801_v11 = vadd.f32 %v800_v9, %v390_v7  ;;  %v2125_v6 = vld [vmem:[#allocation2 + $0xb0] sm:$0xff]   ;;  %v2126_v7 = vld [vmem:[#allocation2 + $0xa8] sm:$0xff]   ;;  %v2127_v8 = vld [vmem:[#allocation2 + $0xa0] sm:$0xff]  }
 0x298   :  { %v759_v12 = vpop.f32.mrf.mxu0  ;;  %v802_v13 = vpop.f32.mrf.mxu1 }
 0x299   :  { %v760_v15 = vadd.f32 %v759_v12, %v386_v4  ;;  %v803_v16 = vadd.f32 %v802_v13, %v394_v5  ;;  %v805_v22 = vpack.c.bf16 %v758_v10, %v754_v17  ;;  %v807_v23 = vpack.c.bf16 %v801_v11, %v797_v18  ;;  %v2124_v5 = vld [vmem:[#allocation2 + $0xb8] sm:$0xff]   ;;  %v1777_v12 = vld [vmem:[%s2314_s4 + $0x9] ss:$0 sm:$0xff] }
 0x29b   :  { %v806_v19 = vpack.c.bf16 %v760_v15, %v756_v37  ;;  %v808_v20 = vpack.c.bf16 %v803_v16, %v799_v14 }
 0x29d   :  { %1237 = vmatprep.mubr.bf16.mxu0 %v806_v19  ;;  %1280 = vmatprep.mubr.bf16.mxu1 %v808_v20 }
 0x29e   :  { %1238 = vmatmul.mubr.bf16.vlgmr.msra.gmra.mxu0 %v805_v22  ;;  %1281 = vmatmul.mubr.bf16.vlgmr.msra.gmra.mxu1 %v807_v23 }
 0x29f   :  { %1809 = vmatpush3.bf16.msra.mxu0 %v2105_v21  ;;  %1867 = vmatprep.mubr.msk.bf16.mxu1 %vm2210_vm0, %v2209_v0 }
 0x2a0   :  { %1810 = vmatprep.subr.bf16.mxu0 %v2106_v24  ;;  %1852 = vmatpush3.bf16.msra.mxu1 %v2120_v41 }
 0x2a1   :  { %1853 = vmatprep.subr.bf16.mxu1 %v2209_v0 }
 0x2a3   :  { %1811 = vmatpush3.bf16.msra.mxu0 %v2107_v25 }
 0x2a4   :  { %1812 = vmatprep.subr.bf16.mxu0 %v2108_v26  ;;  %1854 = vmatpush3.bf16.msra.mxu1 %v2121_v42 }
 0x2a5   :  { %1855 = vmatprep.subr.bf16.mxu1 %v2209_v0 }
 0x2a7   :  { %1813 = vmatpush3.bf16.msra.mxu0 %v2109_v27 }
 0x2a8   :  { %1814 = vmatprep.subr.bf16.mxu0 %v2110_v28  ;;  %1856 = vmatpush3.bf16.msra.mxu1 %v2122_v43 }
 0x2a9   :  { %1857 = vmatprep.subr.bf16.mxu1 %v2209_v0 }
 0x2ab   :  { %1815 = vmatpush3.bf16.msra.mxu0 %v2111_v29 }
 0x2ac   :  { %1816 = vmatprep.subr.bf16.mxu0 %v2112_v30  ;;  %1858 = vmatpush3.bf16.msra.mxu1 %v2123_v44 }
 0x2ad   :  { %1859 = vmatprep.subr.bf16.mxu1 %v2209_v0 }
 0x2af   :  { %1817 = vmatpush3.bf16.msra.mxu0 %v2113_v31 }
 0x2b0   :  { %1818 = vmatprep.subr.bf16.mxu0 %v2114_v32  ;;  %1860 = vmatpush3.bf16.msra.mxu1 %v2124_v5 }
 0x2b1   :  { %1861 = vmatprep.subr.bf16.mxu1 %v2209_v0 }
 0x2b3   :  { %1819 = vmatpush3.bf16.msra.mxu0 %v2115_v33 }
 0x2b4   :  { %1820 = vmatprep.subr.bf16.mxu0 %v2116_v34  ;;  %1862 = vmatpush3.bf16.msra.mxu1 %v2125_v6 }
 0x2b5   :  { %1863 = vmatprep.subr.bf16.mxu1 %v2209_v0 }
 0x2b7   :  { %1821 = vmatpush3.bf16.msra.mxu0 %v2117_v35 }
 0x2b8   :  { %1822 = vmatprep.subr.bf16.mxu0 %v2118_v36  ;;  %1864 = vmatpush3.bf16.msra.mxu1 %v2126_v7 }
 0x2b9   :  { %1865 = vmatprep.subr.bf16.mxu1 %v2209_v0  ;;  %v1794_v0 = vld [vmem:[%s2314_s4 + $0xa] ss:$0 sm:$0xff] }
 0x2bb   :  { %1823 = vmatpush3.bf16.msra.mxu0 %v2119_v40 }
 0x2bc   :  { %1866 = vmatpush3.bf16.msra.mxu1 %v2127_v8 }
 0x35e   :  { %v1239_v48 = vpop.f32.mrf.mxu0  ;;  %v1282_v49 = vpop.f32.mrf.mxu1 }
 0x35f   :  { %v1240_v53 = vadd.f32 %v1239_v48, %v878_v47 }
 0x360   :  { %v1241_v50 = vpop.f32.mrf.mxu0  ;;  %v1284_v51 = vpop.f32.mrf.mxu1 }
 0x361   :  { %v1242_v52 = vadd.f32 %v1241_v50, %v882_v46  ;;  %v1283_v61 = vadd.f32 %v1282_v49, %v1240_v53 }
 0x362   :  { %v1243_v54 = vpop.f32.mrf.mxu0  ;;  %v1286_v55 = vpop.f32.mrf.mxu1 }
 0x363   :  { %v1244_v56 = vadd.f32 %v1243_v54, %v878_v47  ;;  %v1285_v58 = vadd.f32 %v1284_v51, %v1242_v52  ;;  %v1291_v39 = vmax.f32 %v1283_v61, 0.0 }
 0x364   :  { %v1245_v57 = vpop.f32.mrf.mxu0  ;;  %v1288_v62 = vpop.f32.mrf.mxu1 }
 0x365   :  { %v1287_v59 = vadd.f32 %v1286_v55, %v1244_v56  ;;  %v1246_v60 = vadd.f32 %v1245_v57, %v882_v46  ;;  %v1292_v38 = vmax.f32 %v1285_v58, 0.0 }
 0x367   :  { %v1289_v63 = vadd.f32 %v1288_v62, %v1246_v60  ;;  %v1293_v1 = vmax.f32 %v1287_v59, 0.0 }
 0x369   :  { %v1294_v2 = vmax.f32 %v1289_v63, 0.0  ;;  %v1295_v4 = vpack.c.bf16 %v1293_v1, %v1291_v39 }
 0x36b   :  { %v1296_v3 = vpack.c.bf16 %v1294_v2, %v1292_v38 }
 0x36d   :  { %1464 = vmatprep.mubr.bf16.mxu0 %v1296_v3 }
 0x36e   :  { %1465 = vmatmul.mubr.bf16.vlgmr.msra.gmra.mxu0 %v1295_v4 }
 0x42e   :  { %v1824_v9 = vpop.f32.mrf.mxu0 }
 0x430   :  { %v1825_v10 = vpop.f32.mrf.mxu0 }
 0x431   :  { %v1826_v11 = vadd.f32 %v1825_v10, %v1824_v9 }
 0x432   :  { %v1827_v13 = vpop.f32.mrf.mxu0 }
 0x433   :  { %v1467_v14 = vadd.f32 %v1826_v11, %v1777_v12 }
 0x434   :  { %v1828_v37 = vpop.f32.mrf.mxu0 }
 0x435   :  { %v1829_v15 = vadd.f32 %v1828_v37, %v1827_v13  ;;  %v1473_v17 = vmax.f32 %v1467_v14, 0.0 }
 0x437   :  { %v1470_v16 = vadd.f32 %v1829_v15, %v1777_v12 }
 0x439   :  { %v1474_v18 = vmax.f32 %v1470_v16, 0.0 }
 0x43b   :  { %v1475_v19 = vpack.c.bf16 %v1474_v18, %v1473_v17 }
 0x43d   :  { %1868 = vmatmul.mubr.bf16.vlgmr.msra.gmra.mxu1 %v1475_v19 }
 0x4fd   :  { %v1581_v20 = vpop.f32.mrf.mxu1 }
 0x4fe   :  { %v1582_v21 = vadd.f32 %v1794_v0, %v1581_v20 }
 0x4ff   :  { %v1869_v22 = vpop.f32.mrf.mxu1 }
 0x500   :  { %1588 = vmax.xlane.f32.xlu0 %v1582_v21 }
 0x501   :  { %v1584_v23 = vpop.f32.mrf.mxu1 }
 0x502   :  { %v1585_v24 = vadd.f32 %v1794_v0, %v1584_v23 }
 0x503   :  { %v1870_v25 = vpop.f32.mrf.mxu1 }
 0x504   :  { %1590 = vmax.xlane.f32.xlu0 %v1585_v24 }
 0x589   :  { %v1589_v26 = vpop.xlane.xlu0 %1588 }
 0x58a   :  { %v1592_v27 = vsub.f32 %v1582_v21, %v1589_v26 }
 0x58c   :  { %v1594_v28 = vmul.f32 1.442695, %v1592_v27 }
 0x58d   :  { %v1591_v29 = vpop.xlane.xlu0 %1590 }
 0x58e   :  { %2128 = vpow2.f32 %v1594_v28  ;;  %v1593_v30 = vsub.f32 %v1585_v24, %v1591_v29 }
 0x590   :  { %v1596_v31 = vmul.f32 1.442695, %v1593_v30 }
 0x592   :  { %2130 = vpow2.f32 %v1596_v31 }
 0x59b   :  { %v2129_v32 = vpop.eup %2128 }
 0x59c   :  { %1598 = vadd.xlane.f32.xlu1 %v2129_v32 }
 0x59f   :  { %v2131_v33 = vpop.eup %2130 }
 0x5a0   :  { %1600 = vadd.xlane.f32.xlu1 %v2131_v33 }
 0x625   :  { %v1599_v34 = vpop.xlane.xlu1 %1598 }
 0x626   :  { %2132 = vrcp.f32 %v1599_v34 }
 0x629   :  { %v1601_v35 = vpop.xlane.xlu1 %1600 }
 0x62a   :  { %2134 = vrcp.f32 %v1601_v35 }
 0x633   :  { %v2133_v36 = vpop.eup %2132 }
 0x634   :  { %v1604_v40 = vmul.f32 %v2133_v36, %v1599_v34 }
 0x636   :  { %v1606_v41 = vsub.f32 2.0, %v1604_v40 }
 0x637   :  { %v2135_v42 = vpop.eup %2134 }
 0x638   :  { %v1608_v43 = vmul.f32 %v2133_v36, %v1606_v41  ;;  %v1605_v44 = vmul.f32 %v2135_v42, %v1601_v35 }
 0x63a   :  { %v1610_v45 = vmul.f32 %v1608_v43, %v1599_v34  ;;  %v1607_v46 = vsub.f32 2.0, %v1605_v44 }
 0x63c   :  { %v1612_v47 = vsub.f32 2.0, %v1610_v45  ;;  %v1609_v48 = vmul.f32 %v2135_v42, %v1607_v46 }
 0x63e   :  { %v1614_v49 = vmul.f32 %v1612_v47, %v1608_v43  ;;  %v1611_v50 = vmul.f32 %v1609_v48, %v1601_v35 }
 0x640   :  { %v1616_v51 = vmul.f32 %v2129_v32, %v1614_v49  ;;  %v1613_v52 = vsub.f32 2.0, %v1611_v50 }
 0x642   :  { %1618 = vst [vmem:[%s2315_s5] sm:$0xff] %v1616_v51  ;;  %v1615_v53 = vmul.f32 %v1613_v52, %v1609_v48 }
 0x644   :  { %v1617_v54 = vmul.f32 %v2131_v33, %v1615_v53 }
 0x646   :  { %1619 = vst [vmem:[%s2315_s5 + $0x8] sm:$0xff] %v1617_v54 }
 0x647   :  { %1624 = vsyncpa [#allocation3], 1 }
 0x648   :  { %1625 = vsyncpa [#allocation5], 1 }

</bundles_post_ra>
